<compile_context>
chip_gen: v7x
topology: tpu7x:2x2x1
jax: 0.10.0
libtpu: 0.0.40
codegen_flags: <defaults>
</compile_context>

<pallas_src>
import functools
import math

import jax
import jax.numpy as jnp
from jax.experimental import pallas as pl
from jax.experimental.pallas import tpu as pltpu

OMEGA0 = 30.0
_LANE = 128


def _round_up(a, m):
    return -(-a // m) * m


def _choose_chunk_taps(K, C):
    # Single chunk while the static unroll / scratch stays small; otherwise chunk the
    # tap axis in groups of 32 (multiple of 8 -> taps*C obeys the sublane rule) so the
    # per-step im2col scratch, weight block and unrolled loop stay bounded while the
    # MXU contraction depth is 32*C.  (With very small C the depth is shallow; the
    # trade-off is documented rather than unrolling >32 taps.)
    if K <= 32:
        return K
    return 32


# ----------------------------------------------------------------------------
# Kernel-net (SIREN MLP): positions (K, 1) -> flat kernel (K, n_pad), bf16.
# Column index j = c*O + o (output layer pre-permuted + lane-padded at init), so a
# slice to C*O columns followed by a pure row-major reshape yields the (K*C, O)
# weight the conv kernel consumes.
# ----------------------------------------------------------------------------
def kernelnet_kernel(p_ref, w1_ref, b1_ref, w2_ref, b2_ref, wo_ref, bo_ref, o_ref):
    p = p_ref[...]                                              # (kt, 1) f32
    # first layer has input dim 1 -> matmul == broadcast multiply
    h = jnp.sin(OMEGA0 * (p * w1_ref[...] + b1_ref[...]))       # (kt, H)
    h = jnp.sin(OMEGA0 * (jnp.dot(h, w2_ref[...],
                                  preferred_element_type=jnp.float32) + b2_ref[...]))
    flat = jnp.dot(h, wo_ref[...],
                   preferred_element_type=jnp.float32) + bo_ref[...]
    o_ref[...] = flat.astype(o_ref.dtype)                       # bf16, lane-dense (n_pad)


def run_kernelnet(p, w1, b1, w2, b2, wo_p, bo_p):
    K = p.shape[0]
    H = w1.shape[1]
    n_pad = wo_p.shape[1]            # multiple of 128 (padded at init) -> lane-dense stores
    # Tile the position axis so the (K, n_pad) activation never has to sit in VMEM
    # whole when K ~ L; the MLP weights are resident across grid steps.
    k_tile = K if K <= 1024 else 512
    n_k = pl.cdiv(K, k_tile)
    return pl.pallas_call(
        kernelnet_kernel,
        out_shape=jax.ShapeDtypeStruct((K, n_pad), jnp.bfloat16),
        grid_spec=pltpu.PrefetchScalarGridSpec(
            num_scalar_prefetch=0,
            grid=(n_k,),
            in_specs=[
                pl.BlockSpec((k_tile, 1), lambda i: (i, 0)),
                pl.BlockSpec((1, H), lambda i: (0, 0)),
                pl.BlockSpec((1, H), lambda i: (0, 0)),
                pl.BlockSpec((H, H), lambda i: (0, 0)),
                pl.BlockSpec((1, H), lambda i: (0, 0)),
                pl.BlockSpec((H, n_pad), lambda i: (0, 0)),
                pl.BlockSpec((1, n_pad), lambda i: (0, 0)),
            ],
            out_specs=pl.BlockSpec((k_tile, n_pad), lambda i: (i, 0)),
        ),
        compiler_params=pltpu.CompilerParams(
            dimension_semantics=("parallel",)),
    )(p, w1, b1, w2, b2, wo_p, bo_p)


# ----------------------------------------------------------------------------
# Valid 1D convolution, NLC in / NLC out, K chunked as a reduction grid axis.
#   x      : (B, L_pad, C)       bf16   (time zero-padded; L_pad = T_pad + K_pad - 1)
#   w      : (K_pad*C, O)        bf16   (row r = k*C + c; zero rows for padded taps)
#   bias   : (1, O)              f32
#   out    : (B, T_pad, O)       f32    (resident f32 accumulator across the kc axis)
# grid = (B, time_tiles, k_chunks); B and time are "parallel" (v7x: both TCs busy even
# at B=1), the k-chunk axis shares the resident output block so it is "arbitrary".
# ----------------------------------------------------------------------------
def conv1d_kernel(x_ref, w_ref, b_ref, o_ref, xcol_ref, *, taps, C, t_tile, n_kc):
    t = pl.program_id(1)
    kc = pl.program_id(2)
    t0 = pl.multiple_of(t * t_tile, t_tile)      # no clamp: T is padded in the wrapper
    base = t0 + kc * taps                        # first tap of this chunk

    # im2col into bf16 VMEM scratch: columns [j*C, (j+1)*C) hold x[base+j : base+j+t_tile, :].
    # Per-tap loads (not one big window) keep live ranges bounded; `taps` is a small
    # static int (<= 32) so the loop is fully unrolled with static store offsets.
    # NOTE: for small C these column stores are lane-masked; the data volume per chunk
    #       is small in that regime, so this is accepted rather than adding XLU transposes.
    for j in range(taps):
        xcol_ref[:, j * C:(j + 1) * C] = x_ref[0, pl.ds(base + j, t_tile), :]

    # Chunk contraction on the MXU with the weight as the stationary operand and the
    # time axis streaming:  (t_tile, taps*C) @ (taps*C, O) -> (t_tile, O), f32 acc.
    part = jnp.dot(xcol_ref[...], w_ref[...], preferred_element_type=jnp.float32)

    if n_kc == 1:
        o_ref[0, :, :] = b_ref[...] + part
    else:
        @pl.when(kc == 0)
        def _():
            o_ref[0, :, :] = b_ref[...] + part   # bias folded into the accumulator init

        @pl.when(kc > 0)
        def _():
            o_ref[0, :, :] = o_ref[0, :, :] + part


def _conv_vmem_limit_bytes(L_pad, C, taps, t_tile, O):
    """Explicit scoped-VMEM limit from the (padded, double-buffered) block sizes."""
    x_b = 2 * _round_up(L_pad, 16) * _round_up(C, _LANE) * 2            # bf16 slab, 2 bufs
    w_b = 2 * _round_up(taps * C, 16) * _round_up(O, _LANE) * 2         # bf16 chunk, 2 bufs
    bias_b = 2 * 8 * _round_up(O, _LANE) * 4
    o_b = 2 * _round_up(t_tile, 8) * _round_up(O, _LANE) * 4            # f32 out tile, 2 bufs
    col_b = _round_up(t_tile, 16) * _round_up(taps * C, _LANE) * 2      # bf16 im2col scratch
    need = x_b + w_b + bias_b + o_b + col_b
    try:
        physical = pltpu.get_tpu_info().vmem_capacity_bytes
    except Exception:  # pragma: no cover - conservative fallback
        physical = 64 << 20
    ceiling = (100 << 20) if physical >= (128 << 20) else (56 << 20)    # v5e/v6e vs v7x
    return int(min(ceiling, max(32 << 20, 2 * need + (4 << 20))))


def run_conv1d(x_nlc_pad, w_kco, bias_1o, *, taps, t_tile, T_pad):
    B, L_pad, C = x_nlc_pad.shape
    KCp, O = w_kco.shape
    n_t = T_pad // t_tile
    n_kc = KCp // (taps * C)
    kern = functools.partial(conv1d_kernel, taps=taps, C=C, t_tile=t_tile, n_kc=n_kc)
    vmem_limit = _conv_vmem_limit_bytes(L_pad, C, taps, t_tile, O)
    return pl.pallas_call(
        kern,
        out_shape=jax.ShapeDtypeStruct((B, T_pad, O), jnp.float32),
        grid_spec=pltpu.PrefetchScalarGridSpec(
            num_scalar_prefetch=0,
            grid=(B, n_t, n_kc),
            in_specs=[
                # full (L_pad, C) bf16 slab per batch; index constant in t and kc ->
                # DMA'd once per batch (see halo-tiling TODO for very long sequences)
                pl.BlockSpec((1, L_pad, C), lambda b, t, k: (b, 0, 0)),
                # weight chunk streamed over the kc axis (resident when n_kc == 1)
                pl.BlockSpec((taps * C, O), lambda b, t, k: (k, 0)),
                pl.BlockSpec((1, O), lambda b, t, k: (0, 0)),
            ],
            # output tile resident across the kc axis only (f32 accumulator)
            out_specs=pl.BlockSpec((1, t_tile, O), lambda b, t, k: (b, t, 0)),
            scratch_shapes=[pltpu.VMEM((t_tile, taps * C), jnp.bfloat16)],
        ),
        compiler_params=pltpu.CompilerParams(
            dimension_semantics=("parallel", "parallel", "arbitrary"),
            vmem_limit_bytes=vmem_limit),
    )(x_nlc_pad, w_kco, bias_1o)


# ----------------------------------------------------------------------------
# CKConv forward (wrapper).  Wrapper-side transposes / pads are amortized XLA ops.
# ----------------------------------------------------------------------------
def ckconv_forward(x_ncl, params, kernel_size, *, max_t_tile=512):
    """x_ncl: (B, C, L) float32 (PyTorch NCL layout). Returns (B, O, L-K+1) float32."""
    B, C, L = x_ncl.shape
    O = params["bias"].shape[0]
    K = kernel_size
    T_out = L - K + 1

    # 1) relative kernel positions, linspace(-1, 1, K)
    p = jnp.linspace(-1.0, 1.0, K, dtype=jnp.float32).reshape(K, 1)

    # 2) generate the convolution kernel on the fly (Pallas SIREN MLP), bf16.
    flat = run_kernelnet(p, params["w1"], params["b1"], params["w2"], params["b2"],
                         params["wo_p"], params["bo_p"])          # (K, n_pad) bf16
    # drop the lane padding, then a pure row-major reshape: row r = k*C + c
    w_kco = flat[:, :C * O].reshape(K * C, O)                     # (K*C, O) bf16

    # tiling parameters
    taps = _choose_chunk_taps(K, C)
    n_kc = pl.cdiv(K, taps)
    K_pad = n_kc * taps
    # NOTE(perf): sweep max_t_tile up to 1024 on v5e/v6e; 512 is the safer v7x default.
    t_tile = min(max_t_tile, _round_up(T_out, 16))
    T_pad = _round_up(T_out, t_tile)
    L_pad = T_pad + K_pad - 1

    # zero rows for padded taps -> they contribute nothing to valid outputs
    if K_pad > K:
        w_kco = jnp.pad(w_kco, ((0, (K_pad - K) * C), (0, 0)))

    # 3) valid conv1d (Pallas).  x: NCL -> NLC, zero-padded along time, bf16
    #    (intentional quantization of the conv path; accumulation stays f32).
    x_nlc = jnp.transpose(x_ncl, (0, 2, 1)).astype(jnp.bfloat16)
    x_nlc = jnp.pad(x_nlc, ((0, 0), (0, L_pad - L), (0, 0)))

    bias = params["bias"].reshape(1, O).astype(jnp.float32)

    y_nlc = run_conv1d(x_nlc, w_kco, bias, taps=taps, t_tile=t_tile, T_pad=T_pad)
    # back to the PyTorch NCL output layout, dropping the time padding
    return jnp.transpose(y_nlc[:, :T_out, :], (0, 2, 1))


def init_params(key, in_channels, out_channels, hidden, kernel_size):
    C, O, H, K = in_channels, out_channels, hidden, kernel_size
    k1, k2, k3 = jax.random.split(key, 3)
    # SIREN-style init (first layer in-dim = 1)
    w1 = jax.random.uniform(k1, (1, H), jnp.float32, -1.0, 1.0)
    b1 = jnp.zeros((1, H), jnp.float32)
    bound = math.sqrt(6.0 / H) / OMEGA0
    w2 = jax.random.uniform(k2, (H, H), jnp.float32, -bound, bound)
    b2 = jnp.zeros((1, H), jnp.float32)
    bound_o = math.sqrt(6.0 / H)
    wo = jax.random.uniform(k3, (H, O * C), jnp.float32, -bound_o, bound_o)
    # Chang initialization: scale output linear by sqrt(1 / (in_channels * kernel_size))
    wo = wo * math.sqrt(1.0 / (C * K))
    bo = jnp.zeros((1, O * C), jnp.float32)
    bias = jnp.zeros((O,), jnp.float32)  # CKConvBase: bias filled with 0.0
    # One-time column permutation (o*C + c) -> (c*O + o): lets the Pallas path consume
    # the generated kernel as (K*C, O) via a pure row-major reshape.  Must exactly
    # invert PyTorch's view(O, C, K) index order.  The permuted columns are then
    # zero-padded to a multiple of 128 so the kernel-net output stores are lane-dense.
    wo_p = wo.reshape(H, O, C).transpose(0, 2, 1).reshape(H, C * O)
    bo_p = bo.reshape(1, O, C).transpose(0, 2, 1).reshape(1, C * O)
    n_pad = _round_up(C * O, _LANE)
    if n_pad > C * O:
        wo_p = jnp.pad(wo_p, ((0, 0), (0, n_pad - C * O)))
        bo_p = jnp.pad(bo_p, ((0, 0), (0, n_pad - C * O)))
    return dict(w1=w1, b1=b1, w2=w2, b2=b2, wo=wo, bo=bo,
                wo_p=wo_p, bo_p=bo_p, bias=bias)


# ----------------------------------------------------------------------------
# Pure-JAX f32 reference (PyTorch-layout weights, HIGHEST precision) for checking.
# ----------------------------------------------------------------------------
def ckconv_reference(x_ncl, params, kernel_size):
    C = x_ncl.shape[1]
    O = params["bias"].shape[0]
    K = kernel_size
    p = jnp.linspace(-1.0, 1.0, K, dtype=jnp.float32).reshape(K, 1)
    h = jnp.sin(OMEGA0 * (p @ params["w1"] + params["b1"]))
    h = jnp.sin(OMEGA0 * (h @ params["w2"] + params["b2"]))
    flat = h @ params["wo"] + params["bo"]                      # (K, O*C)
    w_oik = jnp.transpose(flat.reshape(K, O, C), (1, 2, 0))     # (O, C, K)
    y = jax.lax.conv_general_dilated(
        x_ncl, w_oik, window_strides=(1,), padding="VALID",
        dimension_numbers=("NCH", "OIH", "NCH"),
        precision=jax.lax.Precision.HIGHEST)
    return y + params["bias"][None, :, None]


if __name__ == "__main__":
    B, C, O, L = 2, 4, 8, 16
    HIDDEN = 32
    KERNEL_SIZE = 7  # config.kernel.size (odd)  -> T_out = 16 - 7 + 1 = 10

    key = jax.random.PRNGKey(0)
    kx, kp = jax.random.split(key)
    x = jax.random.normal(kx, (B, C, L), jnp.float32)
    params = init_params(kp, C, O, HIDDEN, KERNEL_SIZE)

    out = jax.block_until_ready(ckconv_forward(x, params, KERNEL_SIZE))
    ref = jax.block_until_ready(ckconv_reference(x, params, KERNEL_SIZE))

    assert out.shape == (B, O, L - KERNEL_SIZE + 1), out.shape
    # The Pallas conv path runs bf16 x bf16 on the MXU (f32 accumulation) against an
    # all-f32 HIGHEST reference; bf16 rounding over a K*C-deep sum sets the tolerance.
    assert jnp.allclose(out, ref, atol=5e-2, rtol=5e-2), (
        f"max abs err {jnp.max(jnp.abs(out - ref))}")

    print("KERNEL_OK")
</pallas_src>

<mosaic_0001>
module attributes {stable_mosaic.version = 11 : i64} {
  func.func @kernelnet_kernel(%arg0: i32, %arg1: memref<7x1xf32, #tpu.memory_space<vmem>>, %arg2: memref<1x32xf32, #tpu.memory_space<vmem>>, %arg3: memref<1x32xf32, #tpu.memory_space<vmem>>, %arg4: memref<32x32xf32, #tpu.memory_space<vmem>>, %arg5: memref<1x32xf32, #tpu.memory_space<vmem>>, %arg6: memref<32x128xf32, #tpu.memory_space<vmem>>, %arg7: memref<1x128xf32, #tpu.memory_space<vmem>>, %arg8: memref<7x128xbf16, #tpu.memory_space<vmem>>) attributes {dimension_semantics = [#tpu.dimension_semantics<parallel>], iteration_bounds = array<i64: 1>, scalar_prefetch = 0 : i64, scratch_operands = 0 : i64, tpu.core_type = #tpu.core_type<tc>, window_params = [{transform_indices = @transform_0, window_bounds = array<i64: 7, 1>}, {pipeline_mode = #tpu.pipeline_mode<synchronous>, transform_indices = @transform_1, window_bounds = array<i64: 1, 32>}, {pipeline_mode = #tpu.pipeline_mode<synchronous>, transform_indices = @transform_2, window_bounds = array<i64: 1, 32>}, {pipeline_mode = #tpu.pipeline_mode<synchronous>, transform_indices = @transform_3, window_bounds = array<i64: 32, 32>}, {pipeline_mode = #tpu.pipeline_mode<synchronous>, transform_indices = @transform_4, window_bounds = array<i64: 1, 32>}, {pipeline_mode = #tpu.pipeline_mode<synchronous>, transform_indices = @transform_5, window_bounds = array<i64: 32, 128>}, {pipeline_mode = #tpu.pipeline_mode<synchronous>, transform_indices = @transform_6, window_bounds = array<i64: 1, 128>}, {transform_indices = @transform_7, window_bounds = array<i64: 7, 128>}]} {
    %c0 = arith.constant 0 : index
    %c0_0 = arith.constant 0 : index
    %0 = vector.load %arg1[%c0, %c0_0] : memref<7x1xf32, #tpu.memory_space<vmem>>, vector<7x1xf32>
    %c0_1 = arith.constant 0 : index
    %c0_2 = arith.constant 0 : index
    %1 = vector.load %arg2[%c0_1, %c0_2] : memref<1x32xf32, #tpu.memory_space<vmem>>, vector<1x32xf32>
    %2 = vector.broadcast %0 : vector<7x1xf32> to vector<7x32xf32>
    %3 = vector.broadcast %1 : vector<1x32xf32> to vector<7x32xf32>
    %4 = arith.mulf %2, %3 : vector<7x32xf32>
    %c0_3 = arith.constant 0 : index
    %c0_4 = arith.constant 0 : index
    %5 = vector.load %arg3[%c0_3, %c0_4] : memref<1x32xf32, #tpu.memory_space<vmem>>, vector<1x32xf32>
    %6 = vector.broadcast %5 : vector<1x32xf32> to vector<7x32xf32>
    %7 = arith.addf %4, %6 : vector<7x32xf32>
    %cst = arith.constant 3.000000e+01 : f32
    %8 = vector.broadcast %cst : f32 to vector<7x32xf32>
    %9 = arith.mulf %8, %7 : vector<7x32xf32>
    %10 = math.sin %9 : vector<7x32xf32>
    %c0_5 = arith.constant 0 : index
    %c0_6 = arith.constant 0 : index
    %11 = vector.load %arg4[%c0_5, %c0_6] : memref<32x32xf32, #tpu.memory_space<vmem>>, vector<32x32xf32>
    %cst_7 = arith.constant dense<0.000000e+00> : vector<7x32xf32>
    %12 = tpu.matmul %10, %11, %cst_7 {dimension_numbers = #tpu.dot_dimension_numbers<[1], [0], [0], [1], [0, 0, 1, 1], [], []>} : vector<7x32xf32>, vector<32x32xf32>, vector<7x32xf32> -> vector<7x32xf32>
    %c0_8 = arith.constant 0 : index
    %c0_9 = arith.constant 0 : index
    %13 = vector.load %arg5[%c0_8, %c0_9] : memref<1x32xf32, #tpu.memory_space<vmem>>, vector<1x32xf32>
    %14 = vector.broadcast %13 : vector<1x32xf32> to vector<7x32xf32>
    %15 = arith.addf %12, %14 : vector<7x32xf32>
    %cst_10 = arith.constant 3.000000e+01 : f32
    %16 = vector.broadcast %cst_10 : f32 to vector<7x32xf32>
    %17 = arith.mulf %16, %15 : vector<7x32xf32>
    %18 = math.sin %17 : vector<7x32xf32>
    %c0_11 = arith.constant 0 : index
    %c0_12 = arith.constant 0 : index
    %19 = vector.load %arg6[%c0_11, %c0_12] : memref<32x128xf32, #tpu.memory_space<vmem>>, vector<32x128xf32>
    %cst_13 = arith.constant dense<0.000000e+00> : vector<7x128xf32>
    %20 = tpu.matmul %18, %19, %cst_13 {dimension_numbers = #tpu.dot_dimension_numbers<[1], [0], [0], [1], [0, 0, 1, 1], [], []>} : vector<7x32xf32>, vector<32x128xf32>, vector<7x128xf32> -> vector<7x128xf32>
    %c0_14 = arith.constant 0 : index
    %c0_15 = arith.constant 0 : index
    %21 = vector.load %arg7[%c0_14, %c0_15] : memref<1x128xf32, #tpu.memory_space<vmem>>, vector<1x128xf32>
    %22 = vector.broadcast %21 : vector<1x128xf32> to vector<7x128xf32>
    %23 = arith.addf %20, %22 : vector<7x128xf32>
    %24 = arith.truncf %23 : vector<7x128xf32> to vector<7x128xbf16>
    %c0_16 = arith.constant 0 : index
    %c0_17 = arith.constant 0 : index
    %25 = vector.load %arg8[%c0_16, %c0_17] : memref<7x128xbf16, #tpu.memory_space<vmem>>, vector<7x128xbf16>
    tpu.vector_store %arg8[%c0_16, %c0_17], %24 {strides = array<i32>} : memref<7x128xbf16, #tpu.memory_space<vmem>>, vector<7x128xbf16>,
    return
  }
  func.func @transform_0(%arg0: i32) -> (i32, i32) {
    %c0_i32 = arith.constant 0 : i32
    %c0_i32_0 = arith.constant 0 : i32
    return %arg0, %c0_i32 : i32, i32
  }
  func.func @transform_1(%arg0: i32) -> (i32, i32) {
    %c0_i32 = arith.constant 0 : i32
    %c0_i32_0 = arith.constant 0 : i32
    %c0_i32_1 = arith.constant 0 : i32
    return %c0_i32, %c0_i32_0 : i32, i32
  }
  func.func @transform_2(%arg0: i32) -> (i32, i32) {
    %c0_i32 = arith.constant 0 : i32
    %c0_i32_0 = arith.constant 0 : i32
    %c0_i32_1 = arith.constant 0 : i32
    return %c0_i32, %c0_i32_0 : i32, i32
  }
  func.func @transform_3(%arg0: i32) -> (i32, i32) {
    %c0_i32 = arith.constant 0 : i32
    %c0_i32_0 = arith.constant 0 : i32
    %c0_i32_1 = arith.constant 0 : i32
    return %c0_i32, %c0_i32_0 : i32, i32
  }
  func.func @transform_4(%arg0: i32) -> (i32, i32) {
    %c0_i32 = arith.constant 0 : i32
    %c0_i32_0 = arith.constant 0 : i32
    %c0_i32_1 = arith.constant 0 : i32
    return %c0_i32, %c0_i32_0 : i32, i32
  }
  func.func @transform_5(%arg0: i32) -> (i32, i32) {
    %c0_i32 = arith.constant 0 : i32
    %c0_i32_0 = arith.constant 0 : i32
    %c0_i32_1 = arith.constant 0 : i32
    return %c0_i32, %c0_i32_0 : i32, i32
  }
  func.func @transform_6(%arg0: i32) -> (i32, i32) {
    %c0_i32 = arith.constant 0 : i32
    %c0_i32_0 = arith.constant 0 : i32
    %c0_i32_1 = arith.constant 0 : i32
    return %c0_i32, %c0_i32_0 : i32, i32
  }
  func.func @transform_7(%arg0: i32) -> (i32, i32) {
    %c0_i32 = arith.constant 0 : i32
    %c0_i32_0 = arith.constant 0 : i32
    return %arg0, %c0_i32 : i32, i32
  }
}

</mosaic_0001>

<bundles_post_ra>
// kernel: tpu_custom_call.1
= control target key start
LH: loop header
LB: loop body
LE: loop exit
PB: predicated region body
PF: predicated region fallthrough
CT: control target
= control target key end

     0   :  { %12 = vsyncpa [#allocation3], 0  ;;  %s817_s0 = inlined_call_operand.vmem [shape: f32[7,1], index: 0, kind: input, shape index: {}]   ;;  %s818_s1 = inlined_call_operand.vmem [shape: f32[1,32], index: 1, kind: input, shape index: {}]   ;;  %s819_s2 = inlined_call_operand.vmem [shape: f32[1,32], index: 2, kind: input, shape index: {}]   ;;  %s820_s3 = inlined_call_operand.hbm [shape: f32[32,32], index: 3, kind: input, shape index: {}]   ;;  %s821_s4 = inlined_call_operand.vmem [shape: f32[1,32], index: 4, kind: input, shape index: {}]   ;;  %s822_s5 = inlined_call_operand.hbm [shape: f32[32,128], index: 5, kind: input, shape index: {}]   ;;  %s823_s6 = inlined_call_operand.vmem [shape: f32[1,128], index: 6, kind: input, shape index: {}]   ;;  %s824_s7 = inlined_call_operand.hbm [shape: bf16[7,128], index: 7, kind: output, shape index: {}]  }
   0x1   :  { %13 = vsyncpa [#allocation6], 0 }
   0x2   :  { %14 = vsyncpa [#allocation4], 0  ;;  %s641_s24 = smov [#allocation2]   ;;  %s569_s28 = scalar_lea.hbm %s820_s3, 512 }
   0x3   :  { %s26_s25 = sshll.u32 %s641_s24, 4  ;;  %p570_p0 = scmp.ne.s32.totalorder %s820_s3, %s569_s28  ;;  %s27_s25 = int_to_ptr.vmem [resolvable:$true] %s26_s25 }
   0x4   :  { %p573_p1 = scmp.lt.u32.totalorder %s569_s28, %s820_s3 }
   0x6   :  { %p575_p2 = pnand %p573_p1, %p570_p0 }
   0x8   :  { %578 = shalt.err (!%p575_p2)
}
   0x9   :  { %s579_s10 = scalar_lea.vmem %s27_s25, 512  ;;  %p584_p4 = scmp.lt.s32.totalorder %s27_s25, %s27_s25 }
   0xa   :  { %p580_p3 = scmp.ne.s32.totalorder %s27_s25, %s579_s10  ;;  %p585_p5 = scmp.lt.s32.totalorder %s579_s10, %s579_s10 }
   0xc   :  { %p586_p6 = por %p585_p5, %p584_p4 }
   0xe   :  { %p587_p7 = pnand %p586_p6, %p580_p3 }
  0x10   :  { %590 = shalt.err (!%p587_p7)
}
  0x11   :  { %s642_s11 = smov 128   ;;  %s643_s12 = smov 8  }
  0x12   :  { %32 = dma.hbm_to_vmem [thread:$0]  %s820_s3, 512, %s27_s25, [#allocation3], %s642_s11, %s642_s11, %s643_s12  }
  0x13   :  { %s644_s15 = smov [#allocation5]   ;;  %s591_s19 = scalar_lea.hbm %s822_s5, 512 }
  0x14   :  { %s40_s16 = sshll.u32 %s644_s15, 4  ;;  %p592_p8 = scmp.ne.s32.totalorder %s822_s5, %s591_s19  ;;  %s41_s16 = int_to_ptr.vmem [resolvable:$true] %s40_s16 }
  0x15   :  { %p595_p9 = scmp.lt.u32.totalorder %s591_s19, %s822_s5 }
  0x17   :  { %p597_p10 = pnand %p595_p9, %p592_p8 }
  0x19   :  { %600 = shalt.err (!%p597_p10)
}
  0x1a   :  { %s601_s24 = scalar_lea.vmem %s41_s16, 512  ;;  %p606_p12 = scmp.lt.s32.totalorder %s41_s16, %s41_s16 }
  0x1b   :  { %p602_p11 = scmp.ne.s32.totalorder %s41_s16, %s601_s24  ;;  %p607_p13 = scmp.lt.s32.totalorder %s601_s24, %s601_s24 }
  0x1d   :  { %p608_p0 = por %p607_p13, %p606_p12 }
  0x1f   :  { %p609_p1 = pnand %p608_p0, %p602_p11 }
  0x21   :  { %612 = shalt.err (!%p609_p1)
}
  0x22   :  { %46 = dma.hbm_to_vmem [thread:$0]  %s822_s5, 512, %s41_s16, [#allocation6], %s642_s11, %s642_s11, %s643_s12  }
  0x23   :  { %635 = dma.done.wait [#allocation3], 512  }
  0x24   :  { %636 = vsyncadd [#allocation3], 4294966784 }
  0x25   :  { %637 = dma.done.wait [#allocation6], 512  }
  0x26   :  { %638 = vsyncadd [#allocation6], 4294966784  ;;  %v645_v0 = vmov 0   ;;  %v55_v1 = vld [vmem:[%s817_s0] sm:$0x7f]  ;;  %v183_v3 = vld [vmem:[#allocation2 + $0x8] sm:$0xff] }
  0x27   :  { %560 = vset.pattern.permute.xlu0 %v645_v0  ;;  %v182_v2 = vld [vmem:[#allocation2] sm:$0xff]  ;;  %v184_v4 = vld [vmem:[#allocation2 + $0x10] sm:$0xff]  ;;  %v646_v5 = vmov 0.0|0.0   ;;  %v185_v7 = vld [vmem:[#allocation2 + $0x18] sm:$0xff]  ;;  %vm647_vm0 = vmmov 0   ;;  %v648_v8 = vmov 0.0  }
  0x28   :  { %59 = vperm.xlu0 %560, %v55_v1   ;;  %525 = vmatprep.subr.bf16.mxu0 %v646_v5  ;;  %v526_v6 = vpack.c.bf16 %v183_v3, %v182_v2  ;;  %v529_v9 = vpack.c.bf16 %v185_v7, %v184_v4  ;;  %v479_v10 = vld [vmem:[%s818_s1] ss:$0 sm:$0xff]  ;;  %v649_v27 = vmov 2102212464   ;;  %v650_v29 = vmov 920167782  }
  0x29   :  { %511 = vmatprep.mubr.msk.f32.mxu0 %vm647_vm0, %v648_v8  ;;  %531 = vmatprep.subr.bf16.mxu1 %v646_v5  ;;  %v480_v11 = vld [vmem:[%s819_s2] ss:$0 sm:$0xff]  ;;  %v651_v33 = vmov 1326507024   ;;  %v652_v35 = vmov 683565275  }
  0x2a   :  { %522 = vmatprep.mubr.msk.f32.mxu1 %vm647_vm0, %v648_v8  ;;  %527 = vmatpush3.bf16.msra.mxu0 %v526_v6  ;;  %v653_v37 = vmov 2475754826   ;;  %v654_v40 = vmov 2131351028   ;;  %vm193_vm13 = vcmask 261120   ;;  %s655_s8 = smov [#allocation7]  }
  0x2b   :  { %528 = vmatprep.subr.bf16.mxu0 %v646_v5  ;;  %s469_s9 = sshll.u32 %s655_s8, 4  ;;  %s470_s9 = int_to_ptr.vmem [resolvable:$true] %s469_s9 }
  0x2c   :  { %s613_s10 = scalar_lea.vmem %s470_s9, 64  ;;  %p618_p3 = scmp.lt.s32.totalorder %s470_s9, %s470_s9 }
  0x2d   :  { %p614_p2 = scmp.ne.s32.totalorder %s470_s9, %s613_s10  ;;  %p619_p4 = scmp.lt.s32.totalorder %s613_s10, %s613_s10 }
  0x2e   :  { %530 = vmatpush3.bf16.msra.mxu0 %v529_v9 }
  0x2f   :  { %p620_p5 = por %p619_p4, %p618_p3 }
  0x31   :  { %p621_p6 = pnand %p620_p5, %p614_p2 }
  0xa7   :  { %v60_v12 = vpop.permute.xlu0 %59 }
  0xa8   :  { %v68_v13 = vmul.f32 %v479_v10, %v60_v12 }
  0xaa   :  { %v76_v14 = vadd.f32 %v480_v11, %v68_v13 }
  0xac   :  { %v732_v15 = vmul.f32 30.0, %v76_v14 }
  0xae   :  { %v81_v16 = vand.u32 2139095040, %v732_v15  ;;  %v78_v17 = vand.u32 2147483647, %v732_v15  ;;  %vm80_vm8 = vcmp.lt.s32.totalorder %v732_v15, 0  ;;  %vm170_vm14 = vweird.f32 %v732_v15 }
  0xb0   :  { %v82_v18 = vshrl.u32 %v81_v16, 23  ;;  %v85_v20 = vand.u32 8388607, %v78_v17  ;;  %vm79_vm9 = vcmp.le.f32.partialorder %v78_v17, 0.7853982 }
  0xb2   :  { %v481_v19 = vadd.s32 4294967169, %v82_v18  ;;  %v86_v23 = vor.u32 8388608, %v85_v20 }
  0xb4   :  { %v88_v21 = vadd.s32 1, %v481_v19  ;;  %v126_v31 = vshll.u32 %v86_v23, 8 }
  0xb6   :  { %vm89_vm1 = vcmp.gt.s32.totalorder %v88_v21, 0 }
  0xb7   :  { %v90_v22 = vsel %vm89_vm1, %v88_v21, 0 }
  0xb8   :  { %v92_v24 = vand.u32 31, %v90_v22  ;;  %v91_v25 = vshrl.u32 %v90_v22, 5 }
  0xba   :  { %v93_v26 = vsub.s32 32, %v92_v24  ;;  %v104_v28 = vshll.u32 %v649_v27, %v92_v24  ;;  %v107_v30 = vshll.u32 %v650_v29, %v92_v24  ;;  %v95_v36 = vshll.u32 %v652_v35, %v92_v24 }
  0xbb   :  { %v98_v39 = vshll.u32 %v653_v37, %v92_v24  ;;  %v101_v42 = vshll.u32 %v654_v40, %v92_v24  ;;  %vm113_vm2 = vcmp.lt.s32.totalorder %v91_v25, 4  ;;  %vm110_vm3 = vcmp.lt.s32.totalorder %v91_v25, 1 }
  0xbc   :  { %v105_v32 = vshrl.u32 %v650_v29, %v93_v26  ;;  %v108_v34 = vshrl.u32 %v651_v33, %v93_v26  ;;  %v96_v38 = vshrl.u32 %v653_v37, %v93_v26  ;;  %v99_v41 = vshrl.u32 %v654_v40, %v93_v26 }
  0xbd   :  { %v102_v43 = vshrl.u32 %v649_v27, %v93_v26  ;;  %v94_v47 = vshrl.u32 %v652_v35, %v93_v26  ;;  %vm111_vm4 = vcmp.lt.s32.totalorder %v91_v25, 2  ;;  %vm112_vm5 = vcmp.lt.s32.totalorder %v91_v25, 3 }
  0xbe   :  { %v106_v44 = vor.u32 %v105_v32, %v104_v28  ;;  %v109_v45 = vor.u32 %v108_v34, %v107_v30  ;;  %v97_v46 = vor.u32 %v96_v38, %v95_v36  ;;  %v100_v48 = vor.u32 %v99_v41, %v98_v39 }
  0xbf   :  { %v103_v49 = vor.u32 %v102_v43, %v101_v42 }
  0xc0   :  { %v119_v50 = vsel %vm113_vm2, %v106_v44, 920167782  ;;  %v123_v51 = vsel %vm113_vm2, %v109_v45, 1326507024  ;;  %v118_v53 = vsel %vm110_vm3, %v97_v46, %v100_v48  ;;  %v114_v56 = vsel %vm110_vm3, %v94_v47, %v97_v46 }
  0xc1   :  { %v115_v52 = vsel %vm113_vm2, %v103_v49, 2102212464  ;;  %v120_v54 = vsel %vm112_vm5, %v103_v49, %v119_v50  ;;  %v122_v55 = vsel %vm110_vm3, %v100_v48, %v103_v49  ;;  %v124_v59 = vsel %vm112_vm5, %v106_v44, %v123_v51  ;;  %v372_v51 = vld [vmem:[#allocation5] sm:$0xff] }
  0xc2   :  { %v116_v57 = vsel %vm112_vm5, %v100_v48, %v115_v52  ;;  %v121_v58 = vsel %vm111_vm4, %v118_v53, %v120_v54  ;;  %v125_v60 = vsel %vm111_vm4, %v122_v55, %v124_v59  ;;  %v373_v52 = vld [vmem:[#allocation5 + $0x8] sm:$0xff]  ;;  %v374_v53 = vld [vmem:[#allocation5 + $0x10] sm:$0xff]  ;;  %v375_v55 = vld [vmem:[#allocation5 + $0x18] sm:$0xff] }
  0xc3   :  { %v749_v61 = vmul.u32.u64.low %v126_v31, %v121_v58  ;;  %v750_v62 = vmul.u32.u64.high %v126_v31, %v121_v58, %v749_v61  ;;  %v752_v63 = vmul.u32.u64.low %v126_v31, %v125_v60  ;;  %v753_v0 = vmul.u32.u64.high %v126_v31, %v125_v60, %v752_v63 }
  0xc4   :  { %v117_v1 = vsel %vm111_vm4, %v114_v56, %v116_v57  ;;  %v532_v54 = vpack.c.bf16 %v373_v52, %v372_v51  ;;  %v535_v56 = vpack.c.bf16 %v375_v55, %v374_v53  ;;  %v485_v57 = vld [vmem:[%s821_s4] ss:$0 sm:$0xff] }
  0xc5   :  { %v136_v2 = vadd.s32 1, %v750_v62  ;;  %v133_v3 = vmul.u32 %v126_v31, %v117_v1  ;;  %vm135_vm6 = vc.u32 %v753_v0, %v749_v61  ;;  %v134_v18 = vadd.s32 %v749_v61, %v753_v0 }
  0xc6   :  { %533 = vmatpush3.bf16.msra.mxu1 %v532_v54 }
  0xc7   :  { %v137_v4 = vsel %vm135_vm6, %v136_v2, %v750_v62  ;;  %534 = vmatprep.subr.bf16.mxu1 %v646_v5 }
  0xc8   :  { %v138_v6 = vadd.s32 %v137_v4, %v133_v3 }
  0xca   :  { %v139_v7 = vadd.s32 536870912, %v138_v6  ;;  %536 = vmatpush3.bf16.msra.mxu1 %v535_v56 }
  0xcc   :  { %v140_v8 = vshrl.u32 %v139_v7, 30 }
  0xce   :  { %v141_v9 = vshll.u32 %v140_v8, 30  ;;  %v164_v32 = vsub.s32 4, %v140_v8 }
  0xd0   :  { %v142_v10 = vsub.s32 %v138_v6, %v141_v9  ;;  %v165_v38 = vsel %vm80_vm8, %v164_v32, %v140_v8 }
  0xd1   :  { %v167_v41 = vsel %vm79_vm9, 0, %v165_v38 }
  0xd2   :  { %v144_v11 = vsub.s32 0, %v142_v10  ;;  %v171_v42 = vadd.s32 3, %v167_v41 }
  0xd4   :  { %v482_v12 = vmin.u32 %v144_v11, %v142_v10  ;;  %v172_v43 = vand.u32 3, %v171_v42 }
  0xd6   :  { %v146_v13 = vclz %v482_v12  ;;  %vm177_vm10 = vcmp.eq.s32.totalorder %v172_v43, 2  ;;  %vm174_vm11 = vcmp.eq.s32.totalorder %v172_v43, 0  ;;  %vm173_vm12 = vcmp.lt.s32.totalorder %v172_v43, 2 }
  0xd8   :  { %v483_v14 = vadd.s32 4294967294, %v146_v13 }
  0xda   :  { %vm484_vm7 = vcmp.lt.s32.totalorder %v483_v14, 0 }
  0xdb   :  { %v149_v16 = vsel %vm484_vm7, 0, %v483_v14 }
  0xdc   :  { %v150_v19 = vsub.s32 32, %v149_v16  ;;  %v154_v20 = vsub.s32 4294967266, %v149_v16  ;;  %v151_v21 = vshll.u32 %v142_v10, %v149_v16 }
  0xde   :  { %v152_v22 = vshrl.u32 %v134_v18, %v150_v19  ;;  %v155_v23 = vadd.s32 127, %v154_v20 }
  0xe0   :  { %v153_v24 = vor.u32 %v152_v22, %v151_v21  ;;  %v156_v25 = vshll.u32 %v155_v23, 23 }
  0xe2   :  { %v157_v26 = vor.u32 4788187, %v156_v25  ;;  %v160_v30 = vcvt.s32.f32 %v153_v24 }
  0xe4   :  { %v158_v28 = vand.u32 2147483647, %v157_v26 }
  0xe6   :  { %v161_v31 = vmul.f32 %v160_v30, %v158_v28 }
  0xe8   :  { %v162_v34 = vxor.u32 2147483648, %v161_v31 }
  0xea   :  { %v163_v36 = vsel %vm80_vm8, %v162_v34, %v161_v31 }
  0xeb   :  { %v166_v39 = vsel %vm79_vm9, %v732_v15, %v163_v36 }
  0xec   :  { %561 = vcosq.f32 %v166_v39 }
  0xed   :  { %563 = vsinq.f32 %v166_v39 }
  0xf6   :  { %v562_v44 = vpop.eup %561 }
  0xf7   :  { %v564_v45 = vpop.eup %563  ;;  %v178_v46 = vxor.u32 2147483648, %v562_v44 }
  0xf8   :  { %v175_v47 = vxor.u32 2147483648, %v564_v45 }
  0xf9   :  { %v179_v48 = vsel %vm177_vm10, %v178_v46, %v564_v45 }
  0xfa   :  { %v176_v49 = vsel %vm174_vm11, %v562_v44, %v175_v47 }
  0xfb   :  { %v180_v17 = vsel %vm173_vm12, %v176_v49, %v179_v48  ;;  %vm457_vm12 = vcmask 1043456  }
  0xfc   :  { %v181_v50 = vsel %vm170_vm14, nan, %v180_v17  ;;  %vm458_vm14 = vsmask.f32 3328 }
  0xfd   :  { %512 = vmatmul.mubr.msk.f32.vlgmr.msra.gmra.mrb[0].mxu0 %vm193_vm13, %v181_v50 }
 0x1d0   :  { %v263_v58 = vpop.f32.mrb[0].mxu0 }
 0x1d1   :  { %v264_v15 = vadd.f32 %v485_v57, %v263_v58  ;;  %v513_v59 = vpop.f32.mrb[1].mxu0 }
 0x1d3   :  { %v769_v60 = vmul.f32 30.0, %v264_v15 }
 0x1d5   :  { %v271_v61 = vand.u32 2139095040, %v769_v60  ;;  %v268_v1 = vand.u32 2147483647, %v769_v60  ;;  %vm270_vm6 = vcmp.lt.s32.totalorder %v769_v60, 0  ;;  %vm360_vm11 = vweird.f32 %v769_v60 }
 0x1d7   :  { %v272_v62 = vshrl.u32 %v271_v61, 23  ;;  %v275_v3 = vand.u32 8388607, %v268_v1  ;;  %vm269_vm7 = vcmp.le.f32.partialorder %v268_v1, 0.7853982 }
 0x1d9   :  { %v487_v63 = vadd.s32 4294967169, %v272_v62  ;;  %v276_v19 = vor.u32 8388608, %v275_v3 }
 0x1db   :  { %v278_v0 = vadd.s32 1, %v487_v63 }
 0x1dd   :  { %vm279_vm15 = vcmp.gt.s32.totalorder %v278_v0, 0 }
 0x1de   :  { %v280_v2 = vsel %vm279_vm15, %v278_v0, 0  ;;  %vm459_vm15 = vmand %vm457_vm12, %vm458_vm14 }
 0x1df   :  { %v282_v5 = vand.u32 31, %v280_v2  ;;  %v281_v6 = vshrl.u32 %v280_v2, 5 }
 0x1e1   :  { %v283_v4 = vsub.s32 32, %v282_v5  ;;  %v285_v7 = vshll.u32 %v652_v35, %v282_v5  ;;  %v288_v8 = vshll.u32 %v653_v37, %v282_v5  ;;  %v291_v11 = vshll.u32 %v654_v40, %v282_v5 }
 0x1e2   :  { %v294_v13 = vshll.u32 %v649_v27, %v282_v5  ;;  %v297_v16 = vshll.u32 %v650_v29, %v282_v5  ;;  %vm300_vm0 = vcmp.lt.s32.totalorder %v281_v6, 1  ;;  %vm303_vm1 = vcmp.lt.s32.totalorder %v281_v6, 4 }
 0x1e3   :  { %v286_v9 = vshrl.u32 %v653_v37, %v283_v4  ;;  %v289_v10 = vshrl.u32 %v654_v40, %v283_v4  ;;  %v292_v12 = vshrl.u32 %v649_v27, %v283_v4  ;;  %v295_v14 = vshrl.u32 %v650_v29, %v283_v4 }
 0x1e4   :  { %v298_v18 = vshrl.u32 %v651_v33, %v283_v4  ;;  %v284_v26 = vshrl.u32 %v652_v35, %v283_v4  ;;  %vm302_vm2 = vcmp.lt.s32.totalorder %v281_v6, 3  ;;  %vm301_vm3 = vcmp.lt.s32.totalorder %v281_v6, 2 }
 0x1e5   :  { %v287_v20 = vor.u32 %v286_v9, %v285_v7  ;;  %v290_v21 = vor.u32 %v289_v10, %v288_v8  ;;  %v293_v22 = vor.u32 %v292_v12, %v291_v11  ;;  %v296_v23 = vor.u32 %v295_v14, %v294_v13 }
 0x1e6   :  { %v299_v37 = vor.u32 %v298_v18, %v297_v16  ;;  %v316_v33 = vshll.u32 %v276_v19, 8 }
 0x1e7   :  { %v305_v24 = vsel %vm303_vm1, %v293_v22, 2102212464  ;;  %v308_v40 = vsel %vm300_vm0, %v287_v20, %v290_v21  ;;  %v312_v25 = vsel %vm300_vm0, %v290_v21, %v293_v22  ;;  %v309_v27 = vsel %vm303_vm1, %v296_v23, 920167782 }
 0x1e8   :  { %v313_v28 = vsel %vm303_vm1, %v299_v37, 1326507024  ;;  %v310_v29 = vsel %vm302_vm2, %v293_v22, %v309_v27  ;;  %v304_v31 = vsel %vm300_vm0, %v284_v26, %v287_v20  ;;  %v306_v32 = vsel %vm302_vm2, %v290_v21, %v305_v24  ;;  %v491_v21 = vld [vmem:[%s823_s6] ss:$0 sm:$0xff] }
 0x1e9   :  { %v314_v30 = vsel %vm302_vm2, %v296_v23, %v313_v28  ;;  %v311_v34 = vsel %vm301_vm3, %v308_v40, %v310_v29  ;;  %v307_v43 = vsel %vm301_vm3, %v304_v31, %v306_v32  ;;  %v460_v24 = vld [vmem:[#allocation7] sm:$0xf] }
 0x1ea   :  { %v315_v36 = vsel %vm301_vm3, %v312_v25, %v314_v30  ;;  %v789_v41 = vmul.u32.u64.low %v316_v33, %v311_v34  ;;  %v790_v42 = vmul.u32.u64.high %v316_v33, %v311_v34, %v789_v41  ;;  %v323_v44 = vmul.u32 %v316_v33, %v307_v43 }
 0x1eb   :  { %v786_v38 = vmul.u32.u64.low %v316_v33, %v315_v36  ;;  %v787_v39 = vmul.u32.u64.high %v316_v33, %v315_v36, %v786_v38 }
 0x1ec   :  { %v326_v35 = vadd.s32 1, %v790_v42 }
 0x1ed   :  { %vm325_vm4 = vc.u32 %v787_v39, %v789_v41  ;;  %v324_v55 = vadd.s32 %v789_v41, %v787_v39 }
 0x1ee   :  { %v327_v45 = vsel %vm325_vm4, %v326_v35, %v790_v42 }
 0x1ef   :  { %v328_v46 = vadd.s32 %v327_v45, %v323_v44 }
 0x1f1   :  { %v329_v47 = vadd.s32 536870912, %v328_v46 }
 0x1f3   :  { %v330_v48 = vshrl.u32 %v329_v47, 30 }
 0x1f5   :  { %v331_v49 = vshll.u32 %v330_v48, 30  ;;  %v354_v3 = vsub.s32 4, %v330_v48 }
 0x1f7   :  { %v332_v17 = vsub.s32 %v328_v46, %v331_v49  ;;  %v355_v7 = vsel %vm270_vm6, %v354_v3, %v330_v48 }
 0x1f8   :  { %v357_v9 = vsel %vm269_vm7, 0, %v355_v7 }
 0x1f9   :  { %v334_v50 = vsub.s32 0, %v332_v17  ;;  %v361_v10 = vadd.s32 3, %v357_v9 }
 0x1fb   :  { %v488_v51 = vmin.u32 %v334_v50, %v332_v17  ;;  %v362_v11 = vand.u32 3, %v361_v10 }
 0x1fd   :  { %v336_v52 = vclz %v488_v51  ;;  %vm367_vm8 = vcmp.eq.s32.totalorder %v362_v11, 2  ;;  %vm364_vm9 = vcmp.eq.s32.totalorder %v362_v11, 0  ;;  %vm363_vm10 = vcmp.lt.s32.totalorder %v362_v11, 2 }
 0x1ff   :  { %v489_v53 = vadd.s32 4294967294, %v336_v52 }
 0x201   :  { %vm490_vm5 = vcmp.lt.s32.totalorder %v489_v53, 0 }
 0x202   :  { %v339_v54 = vsel %vm490_vm5, 0, %v489_v53 }
 0x203   :  { %v340_v56 = vsub.s32 32, %v339_v54  ;;  %v344_v57 = vsub.s32 4294967266, %v339_v54  ;;  %v341_v58 = vshll.u32 %v332_v17, %v339_v54 }
 0x205   :  { %v342_v15 = vshrl.u32 %v324_v55, %v340_v56  ;;  %v345_v59 = vadd.s32 127, %v344_v57 }
 0x207   :  { %v343_v61 = vor.u32 %v342_v15, %v341_v58  ;;  %v346_v62 = vshll.u32 %v345_v59, 23 }
 0x209   :  { %v347_v63 = vor.u32 4788187, %v346_v62  ;;  %v350_v2 = vcvt.s32.f32 %v343_v61 }
 0x20b   :  { %v348_v0 = vand.u32 2147483647, %v347_v63 }
 0x20d   :  { %v351_v5 = vmul.f32 %v350_v2, %v348_v0 }
 0x20f   :  { %v352_v4 = vxor.u32 2147483648, %v351_v5 }
 0x211   :  { %v353_v6 = vsel %vm270_vm6, %v352_v4, %v351_v5 }
 0x212   :  { %v356_v8 = vsel %vm269_vm7, %v769_v60, %v353_v6 }
 0x213   :  { %565 = vcosq.f32 %v356_v8 }
 0x214   :  { %567 = vsinq.f32 %v356_v8 }
 0x21d   :  { %v566_v12 = vpop.eup %565 }
 0x21e   :  { %v568_v13 = vpop.eup %567  ;;  %v368_v14 = vxor.u32 2147483648, %v566_v12 }
 0x21f   :  { %v365_v16 = vxor.u32 2147483648, %v568_v13 }
 0x220   :  { %v369_v18 = vsel %vm367_vm8, %v368_v14, %v568_v13 }
 0x221   :  { %v366_v19 = vsel %vm364_vm9, %v566_v12, %v365_v16 }
 0x222   :  { %v370_v1 = vsel %vm363_vm10, %v366_v19, %v369_v18 }
 0x223   :  { %v371_v20 = vsel %vm360_vm11, nan, %v370_v1 }
 0x224   :  { %523 = vmatmul.mubr.msk.f32.vlgmr.msra.gmra.mrb[0].mxu1 %vm193_vm13, %v371_v20 }
 0x2f7   :  { %v452_v22 = vpop.f32.mrb[0].mxu1 }
 0x2f8   :  { %v453_v23 = vadd.f32 %v491_v21, %v452_v22  ;;  %v524_v37 = vpop.f32.mrb[1].mxu1 }
 0x2fa   :  { %v456_v40 = vpack.c.bf16 %v453_v23, %v453_v23 }
 0x2fc   :  { %v461_v60 = vsel %vm459_vm15, %v456_v40, %v460_v24 }
 0x2fd   :  { %462 = vst [vmem:[#allocation7] sm:$0xf] %v461_v60 }
 0x2fe   :  { %624 = shalt.err (!%p621_p6)
}
 0x2ff   :  { %s625_s12 = scalar_lea.hbm %s824_s7, 64 }
 0x300   :  { %p626_p7 = scmp.ne.s32.totalorder %s824_s7, %s625_s12  ;;  %p629_p8 = scmp.lt.u32.totalorder %s625_s12, %s824_s7 }
 0x302   :  { %p631_p9 = pnand %p629_p8, %p626_p7 }
 0x304   :  { %634 = shalt.err (!%p631_p9)
}
 0x305   :  { %472 = dma.vmem_to_hbm [thread:$0]  %s470_s9, 64, %s824_s7, [#allocation4]  }
 0x306   :  { %639 = dma.done.wait [#allocation4], 64  }
 0x307   :  { %640 = vsyncadd [#allocation4], 4294967232 }
 0x308   :  { %476 = vsyncpa [#allocation3], 1 }
 0x309   :  { %477 = vsyncpa [#allocation6], 1 }
 0x30a   :  { %478 = vsyncpa [#allocation4], 1 }

</bundles_post_ra>
